<compile_context>
chip_gen: v5e
topology: v5e:2x2
jax: 0.10.0
libtpu: 0.0.40
codegen_flags: <defaults>
</compile_context>

<pallas_src>
import math
from functools import partial

import jax
import jax.numpy as jnp
from jax.experimental import pallas as pl
from jax.experimental.pallas import tpu as pltpu

# ----------------------------- config (args) ---------------------------------
ENC_HIDDEN = 32            # args.encoder_hidden_size
REP = 2 * ENC_HIDDEN       # sentence/token rep width == encoder_hidden_size * 2
EMB = 32                   # synthetic token-embedding width
MLP_HIDDEN = 128           # rep_to_logit hidden size (nn.Linear(2H,128))
MAX_LENGTH = 64            # args.max_length (sequence length T)
MAX_SENTS = 8              # batch['max_sent_length'] (S)
VOCAB = 50
TAU = 1.0                  # args.tau   (RelaxedBernoulli temperature)
PI = 0.3                   # args.pi    (Bernoulli prior prob)
BETA = 1.0                 # args.beta
# args.dropout_rate = 0.0 (dropout == identity), mask_scoring_func = 'linear',
# flexible_prior = 'none', use_gold_rationale = use_neg_rationale = False.


# ------------------------------ fused Pallas kernel ---------------------------
def _vib_fused_kernel(emb_ref, aux_ref, pool_ref, expand_ref, wed_ref, w1_ref, hp_ref,
                      out_tok_ref, out_sent_ref, *, inv_tau, prior_pi):
    """One grid step == one batch example.

    emb_ref    : (T, E)    token embeddings for this example
    aux_ref    : (T, 8)    cols: [attn_mask, fixed_tok_mask, sent_mask, noise, wkl, 0,0,0]
                           (per-sentence columns occupy rows 0:S)
    pool_ref   : (S, T)    span-mean pooling matrix (body sentences only)
    expand_ref : (T, S)    sentence -> token repeat_interleave matrix
    wed_ref    : (2E, REP) [w_enc ; w_dec]
    w1_ref     : (REP, 128)
    hp_ref     : (8, 128)  row0=w2, row1=b1, row2=[b_enc|b_dec], row3=[wqa_s|wqa_e],
                           row4=[b2, bqa_s, bqa_e, 0...]
    out_tok_ref: (T, 4)    cols: [token_z, start_logits, end_logits, 0]
    out_sent_ref:(S, 2)    cols: [sent_z, per-example kl (broadcast)]
    """
    T, E = emb_ref.shape
    S = pool_ref.shape[0]
    rep = w1_ref.shape[0]

    emb = emb_ref[...]
    aux = aux_ref[...]
    pool = pool_ref[...]
    expand = expand_ref[...]
    wed = wed_ref[...]
    w1 = w1_ref[...]
    hp = hp_ref[...]

    w_enc = wed[:E, :]
    w_dec = wed[E:, :]
    w2_row = hp[0:1, :]
    b1_row = hp[1:2, :]
    b_enc = hp[2:3, 0:rep]
    b_dec = hp[2:3, rep:2 * rep]
    wqa_s = hp[3:4, 0:rep]
    wqa_e = hp[3:4, rep:2 * rep]
    b2 = hp[4:5, 0:1]
    bqa_s = hp[4:5, 1:2]
    bqa_e = hp[4:5, 2:3]

    am_col = aux[:, 0:1]
    fixed_col = aux[:, 1:2]
    mask_col = aux[0:S, 2:3]
    noise_col = aux[0:S, 3:4]
    wkl_col = aux[0:S, 4:5]

    # ---- encoder (synthetic): token reps + span-mean sentence reps ----
    x = emb * am_col
    tok = jnp.tanh(jnp.dot(x, w_enc, preferred_element_type=jnp.float32) + b_enc)   # (T,REP)
    reps = jnp.dot(pool, tok, preferred_element_type=jnp.float32)                   # (S,REP)

    # ---- rep_to_logit_layer: Linear(2H,128) -> ReLU -> Linear(128,1); dropout=0 ----
    h = jnp.maximum(jnp.dot(reps, w1, preferred_element_type=jnp.float32) + b1_row, 0.0)
    logits = jnp.sum(h * w2_row, axis=-1, keepdims=True) + b2                        # (S,1)

    # ---- RelaxedBernoulli(tau, logits).rsample(); noise = (log u - log(1-u))/tau ----
    z = jax.nn.sigmoid(logits * inv_tau + noise_col)
    z = jnp.where(mask_col > 0.5, z, 0.0)

    # ---- KL( Bernoulli(logits) || Bernoulli(pi) ), per-example (batch mean outside) ----
    q_logit = math.log(prior_pi) - math.log1p(-prior_pi)
    sp_neg_q = math.log1p(math.exp(-q_logit))   # softplus(-q_logit) = -log(pi)
    sp_pos_q = math.log1p(math.exp(q_logit))    # softplus( q_logit) = -log(1-pi)
    softplus = lambda v: jnp.logaddexp(v, 0.0)
    p = jax.nn.sigmoid(logits)
    t1 = p * (sp_neg_q - softplus(-logits))
    t2 = (1.0 - p) * (sp_pos_q - softplus(logits))
    kl11 = jnp.sum((t1 + t2) * wkl_col, axis=0, keepdims=True)                       # (1,1)

    # ---- sentence -> token z (question prefix & last_pos forced to 1 additively) ----
    token_z = jnp.dot(expand, z, preferred_element_type=jnp.float32) + fixed_col     # (T,1)

    # ---- decoder (synthetic QADecoder): token_z-gated projection + VPU span head ----
    xd = emb * token_z
    hd = jnp.tanh(jnp.dot(xd, w_dec, preferred_element_type=jnp.float32) + b_dec)    # (T,REP)
    start_col = jnp.sum(hd * wqa_s, axis=-1, keepdims=True) + bqa_s                  # (T,1)
    end_col = jnp.sum(hd * wqa_e, axis=-1, keepdims=True) + bqa_e                    # (T,1)

    out_tok_ref[:, 0:1] = token_z
    out_tok_ref[:, 1:2] = start_col
    out_tok_ref[:, 2:3] = end_col
    out_tok_ref[:, 3:4] = jnp.zeros_like(token_z)
    out_sent_ref[:, 0:1] = z
    out_sent_ref[:, 1:2] = jnp.zeros_like(z) + kl11


def vib_fused_pallas(emb_flat, aux_flat, pool_flat, expand_flat, wed, w1, head_pack,
                     B, T, S):
    kernel = partial(_vib_fused_kernel, inv_tau=1.0 / TAU, prior_pi=PI)
    return pl.pallas_call(
        kernel,
        out_shape=(jax.ShapeDtypeStruct((B * T, 4), jnp.float32),
                   jax.ShapeDtypeStruct((B * S, 2), jnp.float32)),
        grid=(B,),
        in_specs=[
            pl.BlockSpec((T, emb_flat.shape[1]), lambda b: (b, 0)),   # per-example emb
            pl.BlockSpec((T, aux_flat.shape[1]), lambda b: (b, 0)),   # per-example aux
            pl.BlockSpec((S, T), lambda b: (b, 0)),                   # per-example pool
            pl.BlockSpec((T, S), lambda b: (b, 0)),                   # per-example expand
            pl.BlockSpec(wed.shape, lambda b: (0, 0)),                # weights: resident
            pl.BlockSpec(w1.shape, lambda b: (0, 0)),
            pl.BlockSpec(head_pack.shape, lambda b: (0, 0)),
        ],
        out_specs=(pl.BlockSpec((T, 4), lambda b: (b, 0)),
                   pl.BlockSpec((S, 2), lambda b: (b, 0))),
        compiler_params=pltpu.CompilerParams(dimension_semantics=("parallel",)),
    )(emb_flat, aux_flat, pool_flat, expand_flat, wed, w1, head_pack)


# ------------------------------ plain-JAX glue ---------------------------------
def build_pool(body_starts, body_ends, T):
    """Per-example (B, S, T) span-mean pooling matrices (body sentences only)."""
    t = jnp.arange(T)[None, None, :]
    s = body_starts[:, :, None]
    e = body_ends[:, :, None]
    inside = ((t >= s) & (t < e)).astype(jnp.float32)
    lens = jnp.maximum((body_ends - body_starts).astype(jnp.float32), 1.0)[:, :, None]
    return inside / lens


def build_expand_and_fixed(body_starts, body_ends, q_end, T):
    """(B,T,S) repeat_interleave matrix + (B,T) question-prefix / last-pos mask."""
    lens = body_ends - body_starts
    cum = jnp.concatenate([jnp.zeros_like(lens[:, :1]),
                           jnp.cumsum(lens, axis=1)], axis=1)          # (B,S+1)
    tok = jnp.arange(T)[None, :]
    off = tok - q_end[:, None]                                         # (B,T)
    lo = cum[:, None, :-1]
    hi = cum[:, None, 1:]
    expand = ((off[:, :, None] >= lo) & (off[:, :, None] < hi)).astype(jnp.float32)
    last_pos = q_end + cum[:, -1]
    fixed = ((tok < q_end[:, None]) | (tok == last_pos[:, None])).astype(jnp.float32)
    return expand, fixed


def cross_entropy(logits, targets):
    lse = jax.nn.logsumexp(logits, axis=-1)
    picked = jnp.take_along_axis(logits, targets[:, None], axis=-1)[:, 0]
    return jnp.mean(lse - picked)


def init_params(key):
    ks = jax.random.split(key, 6)
    init = lambda k, shape: (0.02 * jax.random.normal(k, shape)).astype(jnp.float32)
    return dict(
        embedding=init(ks[0], (VOCAB, EMB)),
        w_enc=init(ks[1], (EMB, REP)), b_enc=jnp.zeros((1, REP), jnp.float32),
        w1=init(ks[2], (REP, MLP_HIDDEN)), b1=jnp.zeros((1, MLP_HIDDEN), jnp.float32),
        w2=init(ks[3], (MLP_HIDDEN, 1)), b2=jnp.zeros((1, 1), jnp.float32),
        w_dec=init(ks[4], (EMB, REP)), b_dec=jnp.zeros((1, REP), jnp.float32),
        w_qa=init(ks[5], (REP, 2)), b_qa=jnp.zeros((1, 2), jnp.float32),
    )


def vib_squad_forward(params, batch, noise_key, mode='train'):
    input_ids = batch['input_ids']
    attention_mask = batch['attention_mask'].astype(jnp.float32)
    labels = batch['labels']
    start_positions = labels[:, 0]
    end_positions = labels[:, 1]
    sent_starts = batch['sent_starts']
    sent_ends = batch['sent_ends']
    sent_lengths = batch['sent_lengths']
    q_end = batch['question_end_positions']
    gold = batch['gold_sent_positions']
    B, T = input_ids.shape
    S = batch['max_sent_length']
    assert S <= T and 2 * REP == MLP_HIDDEN

    body_starts = sent_starts[:, 1:]
    body_ends = sent_ends[:, 1:]

    # ---- layout plumbing: per-example blocks, b-major 2-D flats ----
    emb = params['embedding'][input_ids]                              # (B,T,E)
    emb_flat = emb.reshape(B * T, EMB)

    pool_flat = build_pool(body_starts, body_ends, T).reshape(B * S, T)
    expand, fixed = build_expand_and_fixed(body_starts, body_ends, q_end, T)
    expand_flat = expand.reshape(B * T, S)

    sent_mask = (jnp.arange(S)[None, :] < sent_lengths[:, None]).astype(jnp.float32)
    den = jnp.maximum(jnp.sum(sent_mask, axis=1, keepdims=True), 1.0)  # guard 0/0
    wkl = sent_mask / den                                              # (B,S)
    u = jax.random.uniform(noise_key, (B, S), minval=1e-6, maxval=1.0 - 1e-6)
    noise = (jnp.log(u) - jnp.log1p(-u)) / TAU                         # (B,S)

    pad = lambda x: jnp.pad(x, ((0, 0), (0, T - S)))                   # (B,S)->(B,T)
    zeros_bt = jnp.zeros((B, T), jnp.float32)
    aux = jnp.stack([attention_mask, fixed, pad(sent_mask), pad(noise), pad(wkl),
                     zeros_bt, zeros_bt, zeros_bt], axis=-1)           # (B,T,8)
    aux_flat = aux.reshape(B * T, 8)

    # ---- coalesced parameter packs ----
    wed = jnp.concatenate([params['w_enc'], params['w_dec']], axis=0)  # (2E, REP)
    hp = jnp.zeros((8, MLP_HIDDEN), jnp.float32)
    hp = hp.at[0, :].set(params['w2'][:, 0])
    hp = hp.at[1, :].set(params['b1'][0])
    hp = hp.at[2, :REP].set(params['b_enc'][0])
    hp = hp.at[2, REP:2 * REP].set(params['b_dec'][0])
    hp = hp.at[3, :REP].set(params['w_qa'][:, 0])
    hp = hp.at[3, REP:2 * REP].set(params['w_qa'][:, 1])
    hp = hp.at[4, 0].set(params['b2'][0, 0])
    hp = hp.at[4, 1].set(params['b_qa'][0, 0])
    hp = hp.at[4, 2].set(params['b_qa'][0, 1])

    # ---- single fused Pallas call ----
    out_tok, out_sent = vib_fused_pallas(emb_flat, aux_flat, pool_flat, expand_flat,
                                         wed, params['w1'], hp, B, T, S)
    out_tok = out_tok.reshape(B, T, 4)
    out_sent = out_sent.reshape(B, S, 2)
    token_z = out_tok[:, :, 0]
    start_logits = out_tok[:, :, 1]
    end_logits = out_tok[:, :, 2]
    sent_z = out_sent[:, :, 0]
    kl_loss = jnp.mean(out_sent[:, 0, 1])

    pred_loss = 0.5 * (cross_entropy(start_logits, start_positions)
                       + cross_entropy(end_logits, end_positions))
    loss = pred_loss + BETA * kl_loss
    zeros = jnp.zeros_like(loss)   # use_gold_rationale / use_neg_rationale == False
    gold_sent_probs = jnp.take_along_axis(sent_z, gold[:, None], axis=1)[:, 0]
    return {'loss': loss, 'pred_loss': pred_loss, 'kl_loss': kl_loss,
            'start_logits': start_logits, 'end_logits': end_logits,
            'token_z': token_z, 'sent_z': sent_z,
            'sent_rationale_loss': zeros, 'neg_rationale_loss': zeros,
            'gold_sent_probs': gold_sent_probs}


# ------------------------------------ main -------------------------------------
if __name__ == "__main__":
    key = jax.random.PRNGKey(0)
    pkey, ikey, nkey = jax.random.split(key, 3)
    params = init_params(pkey)

    B, T, S = 2, MAX_LENGTH, MAX_SENTS
    input_ids = jax.random.randint(ikey, (B, T), 0, VOCAB)
    # spans: index 0 is the question span; up to S body sentences (zero-length = pad)
    sent_starts = jnp.array([[0, 8, 14, 20, 26, 32, 38, 44, 44],
                             [0, 6, 12, 18, 24, 30, 30, 30, 30]], dtype=jnp.int32)
    sent_ends = jnp.array([[8, 14, 20, 26, 32, 38, 44, 44, 44],
                           [6, 12, 18, 24, 30, 30, 30, 30, 30]], dtype=jnp.int32)
    sent_lengths = jnp.array([6, 4], dtype=jnp.int32)
    q_end = jnp.array([8, 6], dtype=jnp.int32)
    gold = jnp.array([1, 0], dtype=jnp.int32)
    last_pos = q_end + (sent_ends[:, 1:] - sent_starts[:, 1:]).sum(axis=1)
    attention_mask = (jnp.arange(T)[None, :] <= last_pos[:, None]).astype(jnp.int32)
    labels = jnp.array([[15, 18], [13, 16]], dtype=jnp.int32)

    batch = dict(input_ids=input_ids, attention_mask=attention_mask, labels=labels,
                 sent_starts=sent_starts, sent_ends=sent_ends,
                 sent_lengths=sent_lengths, question_end_positions=q_end,
                 gold_sent_positions=gold, max_sent_length=S)

    out = vib_squad_forward(params, batch, nkey, mode='train')
    jax.block_until_ready(out['loss'])
    assert out['sent_z'].shape == (B, S)
    assert out['token_z'].shape == (B, T)
    assert out['start_logits'].shape == (B, T)
    assert bool(jnp.isfinite(out['loss']))
    print("KERNEL_OK")
</pallas_src>

<mosaic_0001>
module attributes {stable_mosaic.version = 11 : i64} {
  func.func @_vib_fused_kernel(%arg0: i32, %arg1: memref<64x32xf32, #tpu.memory_space<vmem>>, %arg2: memref<64x8xf32, #tpu.memory_space<vmem>>, %arg3: memref<8x64xf32, #tpu.memory_space<vmem>>, %arg4: memref<64x8xf32, #tpu.memory_space<vmem>>, %arg5: memref<64x64xf32, #tpu.memory_space<vmem>>, %arg6: memref<64x128xf32, #tpu.memory_space<vmem>>, %arg7: memref<8x128xf32, #tpu.memory_space<vmem>>, %arg8: memref<64x4xf32, #tpu.memory_space<vmem>>, %arg9: memref<8x2xf32, #tpu.memory_space<vmem>>) attributes {dimension_semantics = [#tpu.dimension_semantics<parallel>], iteration_bounds = array<i64: 2>, scalar_prefetch = 0 : i64, scratch_operands = 0 : i64, tpu.core_type = #tpu.core_type<tc>, window_params = [{transform_indices = @transform_0, window_bounds = array<i64: 64, 32>}, {transform_indices = @transform_1, window_bounds = array<i64: 64, 8>}, {transform_indices = @transform_2, window_bounds = array<i64: 8, 64>}, {transform_indices = @transform_3, window_bounds = array<i64: 64, 8>}, {pipeline_mode = #tpu.pipeline_mode<synchronous>, transform_indices = @transform_4, window_bounds = array<i64: 64, 64>}, {pipeline_mode = #tpu.pipeline_mode<synchronous>, transform_indices = @transform_5, window_bounds = array<i64: 64, 128>}, {pipeline_mode = #tpu.pipeline_mode<synchronous>, transform_indices = @transform_6, window_bounds = array<i64: 8, 128>}, {transform_indices = @transform_7, window_bounds = array<i64: 64, 4>}, {transform_indices = @transform_8, window_bounds = array<i64: 8, 2>}]} {
    %c0 = arith.constant 0 : index
    %c0_0 = arith.constant 0 : index
    %0 = vector.load %arg1[%c0, %c0_0] : memref<64x32xf32, #tpu.memory_space<vmem>>, vector<64x32xf32>
    %c0_1 = arith.constant 0 : index
    %c0_2 = arith.constant 0 : index
    %1 = vector.load %arg2[%c0_1, %c0_2] : memref<64x8xf32, #tpu.memory_space<vmem>>, vector<64x8xf32>
    %c0_3 = arith.constant 0 : index
    %c0_4 = arith.constant 0 : index
    %2 = vector.load %arg3[%c0_3, %c0_4] : memref<8x64xf32, #tpu.memory_space<vmem>>, vector<8x64xf32>
    %c0_5 = arith.constant 0 : index
    %c0_6 = arith.constant 0 : index
    %3 = vector.load %arg4[%c0_5, %c0_6] : memref<64x8xf32, #tpu.memory_space<vmem>>, vector<64x8xf32>
    %c0_7 = arith.constant 0 : index
    %c0_8 = arith.constant 0 : index
    %4 = vector.load %arg5[%c0_7, %c0_8] : memref<64x64xf32, #tpu.memory_space<vmem>>, vector<64x64xf32>
    %c0_9 = arith.constant 0 : index
    %c0_10 = arith.constant 0 : index
    %5 = vector.load %arg6[%c0_9, %c0_10] : memref<64x128xf32, #tpu.memory_space<vmem>>, vector<64x128xf32>
    %c0_11 = arith.constant 0 : index
    %c0_12 = arith.constant 0 : index
    %6 = vector.load %arg7[%c0_11, %c0_12] : memref<8x128xf32, #tpu.memory_space<vmem>>, vector<8x128xf32>
    %7 = vector.extract_strided_slice %4 {offsets = [0, 0], sizes = [32, 64], strides = [1, 1]} : vector<64x64xf32> to vector<32x64xf32>
    %8 = vector.extract_strided_slice %4 {offsets = [32, 0], sizes = [32, 64], strides = [1, 1]} : vector<64x64xf32> to vector<32x64xf32>
    %9 = vector.extract_strided_slice %6 {offsets = [0, 0], sizes = [1, 128], strides = [1, 1]} : vector<8x128xf32> to vector<1x128xf32>
    %10 = vector.extract_strided_slice %6 {offsets = [1, 0], sizes = [1, 128], strides = [1, 1]} : vector<8x128xf32> to vector<1x128xf32>
    %11 = vector.extract_strided_slice %6 {offsets = [2, 0], sizes = [1, 64], strides = [1, 1]} : vector<8x128xf32> to vector<1x64xf32>
    %12 = vector.extract_strided_slice %6 {offsets = [2, 64], sizes = [1, 64], strides = [1, 1]} : vector<8x128xf32> to vector<1x64xf32>
    %13 = vector.extract_strided_slice %6 {offsets = [3, 0], sizes = [1, 64], strides = [1, 1]} : vector<8x128xf32> to vector<1x64xf32>
    %14 = vector.extract_strided_slice %6 {offsets = [3, 64], sizes = [1, 64], strides = [1, 1]} : vector<8x128xf32> to vector<1x64xf32>
    %15 = vector.extract_strided_slice %6 {offsets = [4, 0], sizes = [1, 1], strides = [1, 1]} : vector<8x128xf32> to vector<1x1xf32>
    %16 = vector.extract_strided_slice %6 {offsets = [4, 1], sizes = [1, 1], strides = [1, 1]} : vector<8x128xf32> to vector<1x1xf32>
    %17 = vector.extract_strided_slice %6 {offsets = [4, 2], sizes = [1, 1], strides = [1, 1]} : vector<8x128xf32> to vector<1x1xf32>
    %18 = vector.extract_strided_slice %1 {offsets = [0, 0], sizes = [64, 1], strides = [1, 1]} : vector<64x8xf32> to vector<64x1xf32>
    %19 = vector.extract_strided_slice %1 {offsets = [0, 1], sizes = [64, 1], strides = [1, 1]} : vector<64x8xf32> to vector<64x1xf32>
    %20 = vector.extract_strided_slice %1 {offsets = [0, 2], sizes = [8, 1], strides = [1, 1]} : vector<64x8xf32> to vector<8x1xf32>
    %21 = vector.extract_strided_slice %1 {offsets = [0, 3], sizes = [8, 1], strides = [1, 1]} : vector<64x8xf32> to vector<8x1xf32>
    %22 = vector.extract_strided_slice %1 {offsets = [0, 4], sizes = [8, 1], strides = [1, 1]} : vector<64x8xf32> to vector<8x1xf32>
    %23 = vector.broadcast %18 : vector<64x1xf32> to vector<64x32xf32>
    %24 = arith.mulf %0, %23 : vector<64x32xf32>
    %cst = arith.constant dense<0.000000e+00> : vector<64x64xf32>
    %25 = tpu.matmul %24, %7, %cst {dimension_numbers = #tpu.dot_dimension_numbers<[1], [0], [0], [1], [0, 0, 1, 1], [], []>} : vector<64x32xf32>, vector<32x64xf32>, vector<64x64xf32> -> vector<64x64xf32>
    %26 = vector.broadcast %11 : vector<1x64xf32> to vector<64x64xf32>
    %27 = arith.addf %25, %26 : vector<64x64xf32>
    %28 = math.tanh %27 : vector<64x64xf32>
    %cst_13 = arith.constant dense<0.000000e+00> : vector<8x64xf32>
    %29 = tpu.matmul %2, %28, %cst_13 {dimension_numbers = #tpu.dot_dimension_numbers<[1], [0], [0], [1], [0, 0, 1, 1], [], []>} : vector<8x64xf32>, vector<64x64xf32>, vector<8x64xf32> -> vector<8x64xf32>
    %cst_14 = arith.constant dense<0.000000e+00> : vector<8x128xf32>
    %30 = tpu.matmul %29, %5, %cst_14 {dimension_numbers = #tpu.dot_dimension_numbers<[1], [0], [0], [1], [0, 0, 1, 1], [], []>} : vector<8x64xf32>, vector<64x128xf32>, vector<8x128xf32> -> vector<8x128xf32>
    %31 = vector.broadcast %10 : vector<1x128xf32> to vector<8x128xf32>
    %32 = arith.addf %30, %31 : vector<8x128xf32>
    %cst_15 = arith.constant 0.000000e+00 : f32
    %33 = vector.broadcast %cst_15 : f32 to vector<8x128xf32>
    %34 = arith.maximumf %32, %33 : vector<8x128xf32>
    %35 = vector.broadcast %9 : vector<1x128xf32> to vector<8x128xf32>
    %36 = arith.mulf %34, %35 : vector<8x128xf32>
    %cst_16 = arith.constant dense<0.000000e+00> : vector<8xf32>
    %37 = vector.multi_reduction <add>, %36, %cst_16 [1] : vector<8x128xf32> to vector<8xf32>
    %38 = vector.shape_cast %37 : vector<8xf32> to vector<8x1xf32>
    %39 = vector.broadcast %15 : vector<1x1xf32> to vector<8x1xf32>
    %40 = arith.addf %38, %39 : vector<8x1xf32>
    %cst_17 = arith.constant 1.000000e+00 : f32
    %41 = vector.broadcast %cst_17 : f32 to vector<8x1xf32>
    %42 = arith.mulf %40, %41 : vector<8x1xf32>
    %43 = arith.addf %42, %21 : vector<8x1xf32>
    %44 = arith.negf %43 : vector<8x1xf32>
    %45 = math.exp %44 : vector<8x1xf32>
    %cst_18 = arith.constant 1.000000e+00 : f32
    %46 = vector.broadcast %cst_18 : f32 to vector<8x1xf32>
    %47 = arith.addf %46, %45 : vector<8x1xf32>
    %48 = arith.divf %46, %47 : vector<8x1xf32>
    %cst_19 = arith.constant 5.000000e-01 : f32
    %49 = vector.broadcast %cst_19 : f32 to vector<8x1xf32>
    %50 = arith.cmpf ogt, %20, %49 : vector<8x1xf32>
    %cst_20 = arith.constant 0.000000e+00 : f32
    %51 = vector.broadcast %cst_20 : f32 to vector<8x1xf32>
    %52 = arith.select %50, %48, %51 : vector<8x1xi1>, vector<8x1xf32>
    %53 = arith.negf %40 : vector<8x1xf32>
    %54 = math.exp %53 : vector<8x1xf32>
    %cst_21 = arith.constant 1.000000e+00 : f32
    %55 = vector.broadcast %cst_21 : f32 to vector<8x1xf32>
    %56 = arith.addf %55, %54 : vector<8x1xf32>
    %57 = arith.divf %55, %56 : vector<8x1xf32>
    %cst_22 = arith.constant 0.000000e+00 : f32
    %58 = vector.broadcast %cst_22 : f32 to vector<8x1xf32>
    %59 = arith.subf %58, %40 : vector<8x1xf32>
    %cst_23 = arith.constant 0.000000e+00 : f32
    %60 = vector.broadcast %cst_23 : f32 to vector<8x1xf32>
    %61 = arith.maximumf %59, %60 : vector<8x1xf32>
    %62 = vector.broadcast %cst_23 : f32 to vector<8x1xf32>
    %63 = arith.subf %59, %62 : vector<8x1xf32>
    %64 = arith.cmpf one, %63, %63 : vector<8x1xf32>
    %65 = vector.broadcast %cst_23 : f32 to vector<8x1xf32>
    %66 = arith.addf %59, %65 : vector<8x1xf32>
    %67 = math.absf %63 : vector<8x1xf32>
    %cst_24 = arith.constant 0.000000e+00 : f32
    %68 = vector.broadcast %cst_24 : f32 to vector<8x1xf32>
    %69 = arith.subf %68, %67 : vector<8x1xf32>
    %70 = math.exp %69 : vector<8x1xf32>
    %71 = math.log1p %70 : vector<8x1xf32>
    %72 = arith.addf %61, %71 : vector<8x1xf32>
    %73 = arith.select %64, %66, %72 : vector<8x1xi1>, vector<8x1xf32>
    %cst_25 = arith.constant 1.20397282 : f32
    %74 = vector.broadcast %cst_25 : f32 to vector<8x1xf32>
    %75 = arith.subf %74, %73 : vector<8x1xf32>
    %76 = arith.mulf %57, %75 : vector<8x1xf32>
    %cst_26 = arith.constant 1.000000e+00 : f32
    %77 = vector.broadcast %cst_26 : f32 to vector<8x1xf32>
    %78 = arith.subf %77, %57 : vector<8x1xf32>
    %cst_27 = arith.constant 0.000000e+00 : f32
    %79 = vector.broadcast %cst_27 : f32 to vector<8x1xf32>
    %80 = arith.maximumf %40, %79 : vector<8x1xf32>
    %81 = vector.broadcast %cst_27 : f32 to vector<8x1xf32>
    %82 = arith.subf %40, %81 : vector<8x1xf32>
    %83 = arith.cmpf one, %82, %82 : vector<8x1xf32>
    %84 = vector.broadcast %cst_27 : f32 to vector<8x1xf32>
    %85 = arith.addf %40, %84 : vector<8x1xf32>
    %86 = math.absf %82 : vector<8x1xf32>
    %cst_28 = arith.constant 0.000000e+00 : f32
    %87 = vector.broadcast %cst_28 : f32 to vector<8x1xf32>
    %88 = arith.subf %87, %86 : vector<8x1xf32>
    %89 = math.exp %88 : vector<8x1xf32>
    %90 = math.log1p %89 : vector<8x1xf32>
    %91 = arith.addf %80, %90 : vector<8x1xf32>
    %92 = arith.select %83, %85, %91 : vector<8x1xi1>, vector<8x1xf32>
    %cst_29 = arith.constant 0.356674939 : f32
    %93 = vector.broadcast %cst_29 : f32 to vector<8x1xf32>
    %94 = arith.subf %93, %92 : vector<8x1xf32>
    %95 = arith.mulf %78, %94 : vector<8x1xf32>
    %96 = arith.addf %76, %95 : vector<8x1xf32>
    %97 = arith.mulf %96, %22 : vector<8x1xf32>
    %cst_30 = arith.constant dense<0.000000e+00> : vector<1xf32>
    %98 = vector.multi_reduction <add>, %97, %cst_30 [0] : vector<8x1xf32> to vector<1xf32>
    %99 = vector.shape_cast %98 : vector<1xf32> to vector<1x1xf32>
    %cst_31 = arith.constant dense<0.000000e+00> : vector<64x1xf32>
    %100 = tpu.matmul %3, %52, %cst_31 {dimension_numbers = #tpu.dot_dimension_numbers<[1], [0], [0], [1], [0, 0, 1, 1], [], []>} : vector<64x8xf32>, vector<8x1xf32>, vector<64x1xf32> -> vector<64x1xf32>
    %101 = arith.addf %100, %19 : vector<64x1xf32>
    %102 = vector.broadcast %101 : vector<64x1xf32> to vector<64x32xf32>
    %103 = arith.mulf %0, %102 : vector<64x32xf32>
    %cst_32 = arith.constant dense<0.000000e+00> : vector<64x64xf32>
    %104 = tpu.matmul %103, %8, %cst_32 {dimension_numbers = #tpu.dot_dimension_numbers<[1], [0], [0], [1], [0, 0, 1, 1], [], []>} : vector<64x32xf32>, vector<32x64xf32>, vector<64x64xf32> -> vector<64x64xf32>
    %105 = vector.broadcast %12 : vector<1x64xf32> to vector<64x64xf32>
    %106 = arith.addf %104, %105 : vector<64x64xf32>
    %107 = math.tanh %106 : vector<64x64xf32>
    %108 = vector.broadcast %13 : vector<1x64xf32> to vector<64x64xf32>
    %109 = arith.mulf %107, %108 : vector<64x64xf32>
    %cst_33 = arith.constant dense<0.000000e+00> : vector<64xf32>
    %110 = vector.multi_reduction <add>, %109, %cst_33 [1] : vector<64x64xf32> to vector<64xf32>
    %111 = vector.shape_cast %110 : vector<64xf32> to vector<64x1xf32>
    %112 = vector.broadcast %16 : vector<1x1xf32> to vector<64x1xf32>
    %113 = arith.addf %111, %112 : vector<64x1xf32>
    %114 = vector.broadcast %14 : vector<1x64xf32> to vector<64x64xf32>
    %115 = arith.mulf %107, %114 : vector<64x64xf32>
    %cst_34 = arith.constant dense<0.000000e+00> : vector<64xf32>
    %116 = vector.multi_reduction <add>, %115, %cst_34 [1] : vector<64x64xf32> to vector<64xf32>
    %117 = vector.shape_cast %116 : vector<64xf32> to vector<64x1xf32>
    %118 = vector.broadcast %17 : vector<1x1xf32> to vector<64x1xf32>
    %119 = arith.addf %117, %118 : vector<64x1xf32>
    %c0_35 = arith.constant 0 : index
    %c0_36 = arith.constant 0 : index
    %120 = vector.load %arg8[%c0_35, %c0_36] : memref<64x4xf32, #tpu.memory_space<vmem>>, vector<64x1xf32>
    tpu.vector_store %arg8[%c0_35, %c0_36], %101 {strides = array<i32>} : memref<64x4xf32, #tpu.memory_space<vmem>>, vector<64x1xf32>,
    %c0_37 = arith.constant 0 : index
    %c1 = arith.constant 1 : index
    %121 = vector.load %arg8[%c0_37, %c1] : memref<64x4xf32, #tpu.memory_space<vmem>>, vector<64x1xf32>
    tpu.vector_store %arg8[%c0_37, %c1], %113 {strides = array<i32>} : memref<64x4xf32, #tpu.memory_space<vmem>>, vector<64x1xf32>,
    %c0_38 = arith.constant 0 : index
    %c2 = arith.constant 2 : index
    %122 = vector.load %arg8[%c0_38, %c2] : memref<64x4xf32, #tpu.memory_space<vmem>>, vector<64x1xf32>
    tpu.vector_store %arg8[%c0_38, %c2], %119 {strides = array<i32>} : memref<64x4xf32, #tpu.memory_space<vmem>>, vector<64x1xf32>,
    %cst_39 = arith.constant 0.000000e+00 : f32
    %123 = vector.broadcast %cst_39 : f32 to vector<64x1xf32>
    %c0_40 = arith.constant 0 : index
    %c3 = arith.constant 3 : index
    %124 = vector.load %arg8[%c0_40, %c3] : memref<64x4xf32, #tpu.memory_space<vmem>>, vector<64x1xf32>
    tpu.vector_store %arg8[%c0_40, %c3], %123 {strides = array<i32>} : memref<64x4xf32, #tpu.memory_space<vmem>>, vector<64x1xf32>,
    %c0_41 = arith.constant 0 : index
    %c0_42 = arith.constant 0 : index
    %125 = vector.load %arg9[%c0_41, %c0_42] : memref<8x2xf32, #tpu.memory_space<vmem>>, vector<8x1xf32>
    tpu.vector_store %arg9[%c0_41, %c0_42], %52 {strides = array<i32>} : memref<8x2xf32, #tpu.memory_space<vmem>>, vector<8x1xf32>,
    %cst_43 = arith.constant 0.000000e+00 : f32
    %126 = vector.broadcast %cst_43 : f32 to vector<8x1xf32>
    %127 = vector.broadcast %99 : vector<1x1xf32> to vector<8x1xf32>
    %128 = arith.addf %126, %127 : vector<8x1xf32>
    %c0_44 = arith.constant 0 : index
    %c1_45 = arith.constant 1 : index
    %129 = vector.load %arg9[%c0_44, %c1_45] : memref<8x2xf32, #tpu.memory_space<vmem>>, vector<8x1xf32>
    tpu.vector_store %arg9[%c0_44, %c1_45], %128 {strides = array<i32>} : memref<8x2xf32, #tpu.memory_space<vmem>>, vector<8x1xf32>,
    return
  }
  func.func @transform_0(%arg0: i32) -> (i32, i32) {
    %c0_i32 = arith.constant 0 : i32
    %c0_i32_0 = arith.constant 0 : i32
    return %arg0, %c0_i32 : i32, i32
  }
  func.func @transform_1(%arg0: i32) -> (i32, i32) {
    %c0_i32 = arith.constant 0 : i32
    %c0_i32_0 = arith.constant 0 : i32
    return %arg0, %c0_i32 : i32, i32
  }
  func.func @transform_2(%arg0: i32) -> (i32, i32) {
    %c0_i32 = arith.constant 0 : i32
    %c0_i32_0 = arith.constant 0 : i32
    return %arg0, %c0_i32 : i32, i32
  }
  func.func @transform_3(%arg0: i32) -> (i32, i32) {
    %c0_i32 = arith.constant 0 : i32
    %c0_i32_0 = arith.constant 0 : i32
    return %arg0, %c0_i32 : i32, i32
  }
  func.func @transform_4(%arg0: i32) -> (i32, i32) {
    %c0_i32 = arith.constant 0 : i32
    %c0_i32_0 = arith.constant 0 : i32
    %c0_i32_1 = arith.constant 0 : i32
    return %c0_i32, %c0_i32_0 : i32, i32
  }
  func.func @transform_5(%arg0: i32) -> (i32, i32) {
    %c0_i32 = arith.constant 0 : i32
    %c0_i32_0 = arith.constant 0 : i32
    %c0_i32_1 = arith.constant 0 : i32
    return %c0_i32, %c0_i32_0 : i32, i32
  }
  func.func @transform_6(%arg0: i32) -> (i32, i32) {
    %c0_i32 = arith.constant 0 : i32
    %c0_i32_0 = arith.constant 0 : i32
    %c0_i32_1 = arith.constant 0 : i32
    return %c0_i32, %c0_i32_0 : i32, i32
  }
  func.func @transform_7(%arg0: i32) -> (i32, i32) {
    %c0_i32 = arith.constant 0 : i32
    %c0_i32_0 = arith.constant 0 : i32
    return %arg0, %c0_i32 : i32, i32
  }
  func.func @transform_8(%arg0: i32) -> (i32, i32) {
    %c0_i32 = arith.constant 0 : i32
    %c0_i32_0 = arith.constant 0 : i32
    return %arg0, %c0_i32 : i32, i32
  }
}

</mosaic_0001>

<bundles_post_ra>
// kernel: tpu_custom_call.1
= control target key start
LH: loop header
LB: loop body
LE: loop exit
PB: predicated region body
PF: predicated region fallthrough
CT: control target
= control target key end

     0   :  { %s1352_s27 = smov 0   ;;  %s1747_s0 = inlined_call_operand.vmem [shape: f32[128,32], index: 0, kind: input, shape index: {}]   ;;  %s1748_s1 = inlined_call_operand.vmem [shape: f32[128,8], index: 1, kind: input, shape index: {}]   ;;  %s1749_s2 = inlined_call_operand.vmem [shape: f32[16,64], index: 2, kind: input, shape index: {}]   ;;  %s1750_s3 = inlined_call_operand.vmem [shape: f32[128,8], index: 3, kind: input, shape index: {}]   ;;  %s1751_s4 = inlined_call_operand.vmem [shape: f32[64,64], index: 4, kind: input, shape index: {}]   ;;  %s1752_s5 = inlined_call_operand.vmem [shape: f32[64,128], index: 5, kind: input, shape index: {}]   ;;  %s1753_s6 = inlined_call_operand.vmem [shape: f32[8,128], index: 6, kind: input, shape index: {}]   ;;  %s1754_s7 = inlined_call_operand.vmem [shape: f32[128,4], index: 7, kind: output, shape index: {0}]   ;;  %s1755_s8 = inlined_call_operand.vmem [shape: f32[16,2], index: 8, kind: output, shape index: {1}]  }
   0x1 LB: > { %s1358_s28 = sadd.s32 4294967295, %s1296_s27   ;;  %p1177_p0 = scmp.ge.s32.totalorder %s1296_s27, 1  ;;  %s1296_s27 = sphi %s1352_s27, %s19_s27  }
   0x2   : > { %p297_p1 = scmp.lt.s32.totalorder %s1296_s27, 3 }
   0x4   : > { %p298_p2 = pnand %p1177_p0, %p297_p1 }
   0x5   : > { %s1178_s29 = sshll.u32 (!%p298_p2), %s1358_s28, 3  ;;  %p361_p4 = scmp.lt.s32.totalorder (!%p298_p2), %s1358_s28, 1 }
   0x6   : > { %301 = sbr.rel (%p298_p2) target bundleno = 1569 (0x621), region = 48  ;;  %p350_p3 = scmp.lt.s32.totalorder (!%p298_p2), %s1178_s29, 15 }
   0x7   : > { %s1299_s26 = smov (!%p298_p2), 125   ;;  %s1301_s30 = smov (!%p298_p2), 126  }
   0x8   : > { %s1302_s9 = smov (!%p298_p2), 127   ;;  %s1304_s25 = smov (!%p298_p2), 124  }
   0xb   : > { %v409_v0 = vld [vmem:[%s1751_s4 + $0x18] sm:$0xff]  ;;  %v1298_v1 = vmov 0   ;;  %v408_v2 = vld [vmem:[%s1751_s4 + $0x10] sm:$0xff]  ;;  %s1759_s29 = smov (!%p350_p3, %s1178_s29), 15  ;;  %v407_v3 = vld [vmem:[%s1751_s4 + $0x8] sm:$0xff]  ;;  %vm472_vm0 = vcmask 261120  }
   0xc   : > { %1240 = vset.pattern.permute.xlu1 %v1298_v1  ;;  %1239 = vset.pattern.permute.xlu0 %v1298_v1  ;;  %s1372_s14 = sshll.u32 %s1759_s29, 3  ;;  %v406_v12 = vld [vmem:[%s1751_s4] sm:$0xff]  ;;  %v421_v44 = vld [vmem:[%s1752_s5 + $0x38] sm:$0xff]  ;;  %v420_v45 = vld [vmem:[%s1752_s5 + $0x30] sm:$0xff]  ;;  %s1761_s28 = smov (!%p361_p4, %s1358_s28), 1  ;;  %vm546_vm1 = vcmask 523264  }
   0xd   : > { %1241 = vset.pattern.permute.xlu2 %v1298_v1  ;;  %509 = vmatpush.msra.mxu0 %v409_v0  ;;  %s359_s17 = scalar_lea.vmem %s1748_s1, %s1372_s14  ;;  %s1409_s22 = scalar_lea.vmem %s1747_s0, %s1372_s14  ;;  %v419_v46 = vld [vmem:[%s1752_s5 + $0x28] sm:$0xff]  ;;  %v1463_v47 = vld [vmem:[%s1753_s6] sm:$0xff]  ;;  %v417_v50 = vld [vmem:[%s1752_s5 + $0x18] sm:$0xff]  ;;  %vm696_vm7 = vcmask 7168   ;;  %vm732_vm8 = vcmask 64512  }
   0xe   : > { %v1378_v4 = vld [vmem:[%s359_s17 + $0x10] sm:$0xff]  ;;  %v1380_v5 = vld [vmem:[%s359_s17] sm:$0xff]  ;;  %v1387_v7 = vld [vmem:[%s359_s17 + $0x18] sm:$0xff]  ;;  %582 = vmatpush.msra.mxu2 %v421_v44  ;;  %v1469_v49 = vperm.slane %v1463_v47, 2  ;;  %s1182_s20 = sshll.u32 %s1761_s28, 3  ;;  %s1300_s29 = smov 2  }
   0xf   : > { %510 = vmatpush.msra.mxu0 %v408_v2  ;;  %435 = vperm.xlu1 %1240, %v1378_v4   ;;  %v1384_v6 = vld [vmem:[%s359_s17 + $0x20] sm:$0xff]  ;;  %v1389_v8 = vld [vmem:[%s359_s17 + $0x8] sm:$0xff]  ;;  %v1396_v10 = vld [vmem:[%s359_s17 + $0x38] sm:$0xff]  ;;  %s364_s23 = scalar_lea.vmem %s1749_s2, %s1182_s20  ;;  %vm624_vm6 = vcmp.gt.f32.partialorder %v1380_v5, 0.5  ;;  %s369_s12 = scalar_lea.vmem %s1750_s3, %s1372_s14 }
  0x10   : > { %425 = vperm.xlu0 %1239, %v1380_v5   ;;  %445 = vperm.xlu2 %1241, %v1384_v6   ;;  %v1391_v9 = vld [vmem:[%s359_s17 + $0x28] sm:$0xff]  ;;  %v1398_v11 = vld [vmem:[%s359_s17 + $0x30] sm:$0xff]  ;;  %v1412_v13 = vld [vmem:[%s1409_s22] sm:$0xff]  ;;  %s1531_s16 = scalar_lea.vmem %s1755_s8, %s1182_s20  ;;  %s1547_s18 = scalar_lea.vmem %s1754_s7, %s1372_s14 }
  0x11   : > { %511 = vmatpush.msra.mxu0 %v407_v3  ;;  %v1417_v16 = vld [vmem:[%s1409_s22 + $0x8] sm:$0xff]  ;;  %v1422_v19 = vld [vmem:[%s1409_s22 + $0x10] sm:$0xff]  ;;  %v1427_v22 = vld [vmem:[%s1409_s22 + $0x18] sm:$0xff]  ;;  %583 = vmatpush.msra.mxu2 %v420_v45 }
  0x12   : > { %v1432_v26 = vld [vmem:[%s1409_s22 + $0x20] sm:$0xff]  ;;  %v1437_v29 = vld [vmem:[%s1409_s22 + $0x28] sm:$0xff]  ;;  %v1442_v32 = vld [vmem:[%s1409_s22 + $0x30] sm:$0xff] }
  0x13   : > { %512 = vmatpush.msra.mxu0 %v406_v12  ;;  %v1447_v35 = vld [vmem:[%s1409_s22 + $0x38] sm:$0xff]  ;;  %v418_v48 = vld [vmem:[%s1752_s5 + $0x20] sm:$0xff]  ;;  %584 = vmatpush.msra.mxu2 %v419_v46  ;;  %v416_v54 = vld [vmem:[%s1752_s5 + $0x10] sm:$0xff]  ;;  %s1303_s22 = smov 64  }
  0x14   : > { %v415_v56 = vld [vmem:[%s1752_s5 + $0x8] sm:$0xff] }
  0x15   : > { %585 = vmatpush.msra.mxu2 %v418_v48 }
  0x17   : > { %440 = vperm.xlu1 %1240, %v1387_v7   ;;  %586 = vmatpush.msra.mxu2 %v417_v50 }
  0x18   : > { %430 = vperm.xlu0 %1239, %v1389_v8   ;;  %450 = vperm.xlu2 %1241, %v1391_v9  }
  0x19   : > { %587 = vmatpush.msra.mxu2 %v416_v54  ;;  %v405_v54 = vld [vmem:[%s369_s12 + $0x38] sm:$0xff] }
  0x1b   : > { %588 = vmatpush.msra.mxu2 %v415_v56 }
  0x1f   : > { %460 = vperm.xlu1 %1240, %v1396_v10  }
  0x20   : > { %455 = vperm.xlu0 %1239, %v1398_v11  }
  0x28   : > { %601 = vrot.lane.b32.xlu0 %v1380_v5, %s1299_s26 }
  0x6a   : > { %v446_v25 = vpop.permute.xlu2 %445 }
  0x6b   : > { %v467_v27 = vmul.f32 %v446_v25, %v1432_v26 }
  0x72   : > { %v451_v28 = vpop.permute.xlu2 %450 }
  0x73   : > { %v468_v30 = vmul.f32 %v451_v28, %v1437_v29  ;;  %v1507_v28 = vperm.slane %v1463_v47, 4 }
  0x81   : > { %v436_v20 = vpop.permute.xlu1 %435 }
  0x82   : > { %v426_v14 = vpop.permute.xlu0 %425  ;;  %v465_v21 = vmul.f32 %v436_v20, %v1422_v19  ;;  %v570_v20 = vperm.slane %v1463_v47, 1 }
  0x83   : > { %v463_v15 = vmul.f32 %v426_v14, %v1412_v13  ;;  %v397_v14 = vld [vmem:[%s364_s23] sm:$0xff] }
  0x85   : > { %1188 = vmatmul.msk.f32.vlgmr.msra.gmra.mxu0 %vm472_vm0, %v463_v15 }
  0x89   : > { %v441_v23 = vpop.permute.xlu1 %440 }
  0x8a   : > { %v431_v17 = vpop.permute.xlu0 %430  ;;  %v466_v24 = vmul.f32 %v441_v23, %v1427_v22 }
  0x8b   : > { %v464_v18 = vmul.f32 %v431_v17, %v1417_v16  ;;  %v414_v17 = vld [vmem:[%s1752_s5] sm:$0xff] }
  0x8c   : > { %589 = vmatpush.msra.mxu2 %v414_v17  ;;  %v413_v17 = vld [vmem:[%s1751_s4 + $0x38] sm:$0xff] }
  0x8d   : > { %1189 = vmatmul.msk.f32.gmra.mxu0 %vm472_vm0, %v464_v18 }
  0x8e   : > { %1218 = vmatpush.msrb.mxu2 %v413_v17 }
  0x91   : > { %v461_v34 = vpop.permute.xlu1 %460 }
  0x92   : > { %v456_v31 = vpop.permute.xlu0 %455  ;;  %v470_v36 = vmul.f32 %v461_v34, %v1447_v35 }
  0x93   : > { %v469_v33 = vmul.f32 %v456_v31, %v1442_v32 }
  0x95   : > { %1190 = vmatmul.msk.f32.gmra.mxu0 %vm472_vm0, %v465_v21 }
  0x9a   : > { %v602_v31 = vpop.permute.xlu0 %601 }
  0x9d   : > { %1191 = vmatmul.msk.f32.gmra.mxu0 %vm472_vm0, %v466_v24  ;;  %v595_v24 = vperm.slane %v1463_v47, 0 }
  0xa5   : > { %1192 = vmatmul.msk.f32.gmra.mxu0 %vm472_vm0, %v467_v27 }
  0xad   : > { %1193 = vmatmul.msk.f32.gmra.mxu0 %vm472_vm0, %v468_v30 }
  0xb5   : > { %1194 = vmatmul.msk.f32.gmra.mxu0 %vm472_vm0, %v469_v33 }
  0xbd   : > { %1195 = vmatmul.msk.f32.gmra.mxu0 %vm472_vm0, %v470_v36 }
 0x102   : > { %v514_v37 = vpop.f32.mrf.mxu0 }
 0x103   : > { %v515_v0 = vadd.f32 %v514_v37, %v1469_v49 }
 0x10a   : > { %v517_v38 = vpop.f32.mrf.mxu0 }
 0x10b   : > { %v518_v62 = vadd.f32 %v517_v38, %v1469_v49 }
 0x112   : > { %v520_v39 = vpop.f32.mrf.mxu0 }
 0x113   : > { %v521_v60 = vadd.f32 %v520_v39, %v1469_v49 }
 0x11a   : > { %v523_v40 = vpop.f32.mrf.mxu0 }
 0x11b   : > { %v524_v58 = vadd.f32 %v523_v40, %v1469_v49 }
 0x122   : > { %v526_v41 = vpop.f32.mrf.mxu0 }
 0x123   : > { %v527_v57 = vadd.f32 %v526_v41, %v1469_v49 }
 0x12a   : > { %v529_v42 = vpop.f32.mrf.mxu0 }
 0x12b   : > { %v530_v55 = vadd.f32 %v529_v42, %v1469_v49 }
 0x132   : > { %v532_v43 = vpop.f32.mrf.mxu0 }
 0x133   : > { %v533_v52 = vadd.f32 %v532_v43, %v1469_v49 }
 0x13a   : > { %v535_v51 = vpop.f32.mrf.mxu0 }
 0x13b   : > { %v536_v53 = vadd.f32 %v535_v51, %v1469_v49 }
 0x13d   : > { %1242 = vtanh.f32 %v536_v53  ;;  %v404_v53 = vld [vmem:[%s369_s12 + $0x30] sm:$0xff] }
 0x13e   : > { %1244 = vtanh.f32 %v533_v52 }
 0x13f   : > { %1246 = vtanh.f32 %v530_v55 }
 0x140   : > { %1248 = vtanh.f32 %v527_v57 }
 0x141   : > { %1250 = vtanh.f32 %v524_v58 }
 0x142   : > { %1252 = vtanh.f32 %v521_v60 }
 0x143   : > { %v1243_v59 = vpop.eup %1242  ;;  %1254 = vtanh.f32 %v518_v62 }
 0x144   : > { %558 = vmatpush.msra.mxu1 %v1243_v59  ;;  %v1245_v61 = vpop.eup %1244  ;;  %1256 = vtanh.f32 %v515_v0 }
 0x145   : > { %v1247_v63 = vpop.eup %1246 }
 0x146   : > { %559 = vmatpush.msra.mxu1 %v1245_v61  ;;  %v1249_v1 = vpop.eup %1248 }
 0x147   : > { %v1251_v2 = vpop.eup %1250 }
 0x148   : > { %560 = vmatpush.msra.mxu1 %v1247_v63  ;;  %v1253_v3 = vpop.eup %1252 }
 0x149   : > { %v1255_v12 = vpop.eup %1254 }
 0x14a   : > { %561 = vmatpush.msra.mxu1 %v1249_v1  ;;  %v1257_v15 = vpop.eup %1256 }
 0x14c   : > { %562 = vmatpush.msra.mxu1 %v1251_v2 }
 0x14e   : > { %563 = vmatpush.msra.mxu1 %v1253_v3 }
 0x150   : > { %564 = vmatpush.msra.mxu1 %v1255_v12 }
 0x152   : > { %565 = vmatpush.msra.mxu1 %v1257_v15 }
 0x153   : > { %1196 = vmatmul.msk.f32.vlgmr.msra.gmra.mxu1 %vm546_vm1, %v397_v14 }
 0x154   : > { %886 = vmatpush.msrb.mxu1 %v413_v17 }
 0x1d0   : > { %v567_v18 = vpop.f32.mrf.mxu1 }
 0x1d1   : > { %1197 = vmatmul.msk.f32.vlgmr.msra.gmra.mxu2 %vm546_vm1, %v567_v18  ;;  %v412_v18 = vld [vmem:[%s1751_s4 + $0x30] sm:$0xff] }
 0x1d2   : > { %887 = vmatpush.msrb.mxu1 %v412_v18  ;;  %1219 = vmatpush.msrb.mxu2 %v412_v18 }
 0x254   : > { %v591_v21 = vpop.f32.mrf.mxu2 }
 0x255   : > { %v592_v23 = vadd.f32 %v591_v21, %v570_v20  ;;  %v411_v20 = vld [vmem:[%s1751_s4 + $0x28] sm:$0xff] }
 0x256   : > { %888 = vmatpush.msrb.mxu1 %v411_v20  ;;  %1220 = vmatpush.msrb.mxu2 %v411_v20 }
 0x257   : > { %v594_v25 = vmax.f32 %v592_v23, 0.0 }
 0x259   : > { %v596_v27 = vmul.f32 %v595_v24, %v594_v25 }
 0x25b   : > { %597 = vadd.xlane.f32.xlu2 %v596_v27 }
 0x273   : > { %716 = vrot.lane.b32.xlu2 %v1384_v6, %s1302_s9  ;;  %v398_v6 = vld [vmem:[%s369_s12] sm:$0xff] }
 0x2ce   : > { %v598_v30 = vpop.xlane.xlu2 %597 }
 0x2cf   : > { %v1510_v33 = vadd.f32 %v1507_v28, %v598_v30 }
 0x2d1   : > { %v604_v34 = vadd.f32 %v602_v31, %v1510_v33 }
 0x2d3   : > { %v1198_v36 = vmul.f32 -1.442695, %v604_v34  ;;  %v410_v34 = vld [vmem:[%s1751_s4 + $0x20] sm:$0xff] }
 0x2d4   : > { %889 = vmatpush.msrb.mxu1 %v410_v34  ;;  %1221 = vmatpush.msrb.mxu2 %v410_v34 }
 0x2d5   : > { %1258 = vpow2.f32 %v1198_v36  ;;  %v1580_v36 = vperm.slane %v1463_v47, 3 }
 0x2d6   : > { %v717_v3 = vpop.permute.xlu2 %716 }
 0x2db   : > { %v1259_v37 = vpop.eup %1258 }
 0x2dc   : > { %v608_v38 = vadd.f32 1.0, %v1259_v37 }
 0x2de   : > { %1260 = vrcp.f32 %v608_v38  ;;  %v620_v42 = vand.u32 2147483648, %v608_v38  ;;  %v618_v44 = vand.u32 2147483647, %v608_v38  ;;  %vm614_vm3 = vweird.f32 %v608_v38 }
 0x2e0   : > { %v621_v46 = vor.u32 1.1754944e-38, %v620_v42  ;;  %vm619_vm5 = vcmp.eq.f32.partialorder %v618_v44, 8.507059e+37 }
 0x2e4   : > { %v1261_v39 = vpop.eup %1260 }
 0x2e5   : > { %v610_v40 = vmul.f32 %v1261_v39, %v608_v38  ;;  %vm615_vm2 = vweird.f32 %v1261_v39 }
 0x2e6   : > { %vm616_vm4 = vmor %vm614_vm3, %vm615_vm2  ;;  %vm1016_vm2 = vcmask 15368   ;;  %vm1034_vm3 = vcmask 31768  }
 0x2e7   : > { %v611_v41 = vsub.f32 1.0, %v610_v40 }
 0x2e9   : > { %v612_v43 = vmul.f32 %v1261_v39, %v611_v41 }
 0x2eb   : > { %v613_v45 = vadd.f32 %v1261_v39, %v612_v43 }
 0x2ed   : > { %v617_v48 = vsel %vm616_vm4, %v1261_v39, %v613_v45 }
 0x2ee   : > { %v622_v50 = vsel %vm619_vm5, %v621_v46, %v617_v48 }
 0x2ef   : > { %626 = vrot.lane.b32.xlu1 %v622_v50, %s1300_s29 }
 0x2f7   : > { %708 = vrot.lane.b32.xlu1 %v1380_v5, %s1302_s9 }
 0x2ff   : > { %718 = vrot.lane.b32.xlu1 %v1391_v9, %s1302_s9  ;;  %v401_v9 = vld [vmem:[%s369_s12 + $0x18] sm:$0xff] }
 0x307   : > { %720 = vrot.lane.b32.xlu1 %v1398_v11, %s1302_s9  ;;  %v403_v11 = vld [vmem:[%s369_s12 + $0x28] sm:$0xff] }
 0x30f   : > { %722 = vrot.lane.b32.xlu1 %v1396_v10, %s1302_s9  ;;  %v402_v10 = vld [vmem:[%s369_s12 + $0x20] sm:$0xff] }
 0x361   : > { %v627_v51 = vpop.permute.xlu1 %626 }
 0x362   : > { %v629_v52 = vsel %vm624_vm6, %v627_v51, 0.0 }
 0x363   : > { %705 = vrot.lane.b32.xlu0 %v629_v52, %s1301_s30  ;;  %s1305_s30 = smov 1  }
 0x369   : > { %v709_v55 = vpop.permute.xlu1 %708 }
 0x36b   : > { %710 = vrot.lane.b32.xlu0 %v1389_v8, %s1302_s9  ;;  %v400_v8 = vld [vmem:[%s369_s12 + $0x10] sm:$0xff] }
 0x371   : > { %v719_v15 = vpop.permute.xlu1 %718 }
 0x373   : > { %712 = vrot.lane.b32.xlu0 %v1378_v4, %s1302_s9 }
 0x379   : > { %v721_v24 = vpop.permute.xlu1 %720 }
 0x37b   : > { %714 = vrot.lane.b32.xlu0 %v1387_v7, %s1302_s9  ;;  %v399_v7 = vld [vmem:[%s369_s12 + $0x8] sm:$0xff] }
 0x3d5   : > { %v706_v4 = vpop.permute.xlu0 %705 }
 0x3d6   : > { %1043 = vst.msk [vmem:[%s1531_s16] sm:$0xff] %vm696_vm7, %v706_v4  ;;  %772 = vmatpush.msra.mxu3 %v706_v4 }
 0x3d7   : > { %1200 = vmatmul.msk.f32.vlgmr.msra.gmra.mxu3 %vm732_vm8, %v398_v6 }
 0x3dd   : > { %v711_v58 = vpop.permute.xlu0 %710 }
 0x3df   : > { %1201 = vmatmul.msk.f32.gmra.mxu3 %vm732_vm8, %v399_v7 }
 0x3e5   : > { %v713_v61 = vpop.permute.xlu0 %712 }
 0x3e7   : > { %1202 = vmatmul.msk.f32.gmra.mxu3 %vm732_vm8, %v400_v8 }
 0x3ed   : > { %v715_v0 = vpop.permute.xlu0 %714 }
 0x3ef   : > { %1203 = vmatmul.msk.f32.gmra.mxu3 %vm732_vm8, %v401_v9 }
 0x3f7   : > { %1204 = vmatmul.msk.f32.gmra.mxu3 %vm732_vm8, %v402_v10 }
 0x3ff   : > { %1205 = vmatmul.msk.f32.gmra.mxu3 %vm732_vm8, %v403_v11  ;;  %v1611_v11 = vsub.f32 0.0, %v1510_v33 }
 0x401   : > { %vm651_vm14 = vcmp.ne.f32.partialorder %v1611_v11, %v1611_v11 }
 0x407   : > { %1206 = vmatmul.msk.f32.gmra.mxu3 %vm732_vm8, %v404_v53 }
 0x40f   : > { %1207 = vmatmul.msk.f32.gmra.mxu3 %vm732_vm8, %v405_v54 }
 0x45a   : > { %v774_v56 = vpop.f32.mrf.mxu3 }
 0x45b   : > { %v775_v57 = vadd.f32 %v774_v56, %v709_v55 }
 0x45d   : > { %1008 = vst.msk [vmem:[%s1547_s18] sm:$0xff] %vm696_vm7, %v775_v57  ;;  %800 = vperm.xlu0 %1239, %v775_v57   ;;  %v653_v57 = vand.u32 2147483647, %v1611_v11 }
 0x462   : > { %v777_v59 = vpop.f32.mrf.mxu3 }
 0x463   : > { %v778_v60 = vadd.f32 %v777_v59, %v711_v58  ;;  %v674_v58 = vand.u32 2147483647, %v1510_v33  ;;  %v1199_v59 = vmul.f32 -1.442695, %v1510_v33 }
 0x465   : > { %1009 = vst.msk [vmem:[%s1547_s18 + $0x8] sm:$0xff] %vm696_vm7, %v778_v60  ;;  %805 = vperm.xlu1 %1240, %v778_v60  }
 0x46a   : > { %v780_v62 = vpop.f32.mrf.mxu3 }
 0x46b   : > { %v781_v63 = vadd.f32 %v780_v62, %v713_v61 }
 0x46d   : > { %1010 = vst.msk [vmem:[%s1547_s18 + $0x10] sm:$0xff] %vm696_vm7, %v781_v63  ;;  %810 = vperm.xlu1 %1240, %v781_v63   ;;  %v654_v63 = vsub.f32 0.0, %v653_v57 }
 0x472   : > { %v783_v1 = vpop.f32.mrf.mxu3 }
 0x473   : > { %v784_v2 = vadd.f32 %v783_v1, %v715_v0 }
 0x475   : > { %1011 = vst.msk [vmem:[%s1547_s18 + $0x18] sm:$0xff] %vm696_vm7, %v784_v2  ;;  %815 = vperm.xlu1 %1240, %v784_v2   ;;  %v675_v2 = vsub.f32 0.0, %v674_v58 }
 0x47a   : > { %v786_v12 = vpop.f32.mrf.mxu3 }
 0x47b   : > { %v787_v14 = vadd.f32 %v786_v12, %v717_v3 }
 0x47d   : > { %1012 = vst.msk [vmem:[%s1547_s18 + $0x20] sm:$0xff] %vm696_vm7, %v787_v14  ;;  %847 = vrot.lane.b32.xlu1 %v1469_v49, %s1303_s22  ;;  %v723_v49 = vpop.permute.xlu1 %722 }
 0x482   : > { %v789_v21 = vpop.f32.mrf.mxu3 }
 0x483   : > { %v790_v23 = vadd.f32 %v789_v21, %v719_v15  ;;  %v676_v15 = vmul.f32 1.442695, %v675_v2 }
 0x485   : > { %1013 = vst.msk [vmem:[%s1547_s18 + $0x28] sm:$0xff] %vm696_vm7, %v790_v23  ;;  %825 = vperm.xlu0 %1239, %v790_v23  }
 0x48a   : > { %v792_v25 = vpop.f32.mrf.mxu3 }
 0x48b   : > { %v793_v27 = vadd.f32 %v792_v25, %v721_v24 }
 0x48d   : > { %1014 = vst.msk [vmem:[%s1547_s18 + $0x30] sm:$0xff] %vm696_vm7, %v793_v27  ;;  %830 = vperm.xlu0 %1239, %v793_v27  }
 0x492   : > { %v795_v30 = vpop.f32.mrf.mxu3 }
 0x493   : > { %v796_v31 = vadd.f32 %v795_v30, %v723_v49 }
 0x495   : > { %1015 = vst.msk [vmem:[%s1547_s18 + $0x38] sm:$0xff] %vm696_vm7, %v796_v31  ;;  %835 = vperm.xlu2 %1241, %v796_v31   ;;  %820 = vperm.xlu0 %1239, %v787_v14   ;;  %v655_v14 = vmul.f32 1.442695, %v654_v63 }
 0x49d   : > { %692 = vrot.lane.b32.xlu2 %v1380_v5, %s1304_s25  ;;  %965 = vrot.lane.b32.xlu0 %v1580_v36, %s1303_s22 }
 0x4cf   : > { %v801_v37 = vpop.permute.xlu0 %800 }
 0x4d0   : > { %v838_v38 = vmul.f32 %v801_v37, %v1412_v13 }
 0x4d2   : > { %1208 = vmatmul.msk.f32.vlgmr.msrb.gmra.mxu1 %vm472_vm0, %v838_v38 }
 0x4d7   : > { %v806_v39 = vpop.permute.xlu1 %805 }
 0x4d8   : > { %v839_v40 = vmul.f32 %v806_v39, %v1417_v16 }
 0x4da   : > { %1209 = vmatmul.msk.f32.gmra.mxu1 %vm472_vm0, %v839_v40 }
 0x4df   : > { %v811_v5 = vpop.permute.xlu1 %810 }
 0x4e0   : > { %v840_v41 = vmul.f32 %v811_v5, %v1422_v19 }
 0x4e2   : > { %1210 = vmatmul.msk.f32.gmra.mxu1 %vm472_vm0, %v840_v41 }
 0x4e7   : > { %v816_v42 = vpop.permute.xlu1 %815 }
 0x4e8   : > { %v841_v47 = vmul.f32 %v816_v42, %v1427_v22 }
 0x4ea   : > { %1211 = vmatmul.msk.f32.gmra.mxu1 %vm472_vm0, %v841_v47 }
 0x4ef   : > { %v836_v45 = vpop.permute.xlu2 %835  ;;  %v1599_v22 = vpop.permute.xlu1 %847 }
 0x4f0   : > { %v845_v19 = vmul.f32 %v836_v45, %v1447_v35 }
 0x4f7   : > { %v826_v43 = vpop.permute.xlu0 %825 }
 0x4f8   : > { %v843_v13 = vmul.f32 %v826_v43, %v1437_v29 }
 0x4fa   : > { %1213 = vmatmul.msk.f32.vlgmr.msrb.gmra.mxu2 %vm472_vm0, %v843_v13 }
 0x4ff   : > { %v831_v44 = vpop.permute.xlu0 %830 }
 0x500   : > { %v844_v16 = vmul.f32 %v831_v44, %v1442_v32 }
 0x502   : > { %1214 = vmatmul.msk.f32.gmra.mxu2 %vm472_vm0, %v844_v16 }
 0x507   : > { %v821_v46 = vpop.permute.xlu0 %820 }
 0x508   : > { %v842_v48 = vmul.f32 %v821_v46, %v1432_v26 }
 0x50a   : > { %1212 = vmatmul.msk.f32.gmra.mxu1 %vm472_vm0, %v842_v48  ;;  %1215 = vmatmul.msk.f32.gmra.mxu2 %vm472_vm0, %v845_v19  ;;  %vm672_vm0 = vcmp.ne.f32.partialorder %v1510_v33, %v1510_v33 }
 0x50f   : > { %v1602_v51 = vpop.permute.xlu0 %965 }
 0x54f   : > { %v891_v29 = vpop.f32.mrf.mxu1 }
 0x550   : > { %v892_v50 = vadd.f32 %v891_v29, %v1599_v22 }
 0x552   : > { %1262 = vtanh.f32 %v892_v50 }
 0x557   : > { %v894_v32 = vpop.f32.mrf.mxu1 }
 0x558   : > { %v1263_v52 = vpop.eup %1262  ;;  %v895_v6 = vadd.f32 %v894_v32, %v1599_v22 }
 0x559   : > { %v924_v35 = vmul.f32 %v1263_v52, %v1580_v36  ;;  %v968_v26 = vmul.f32 %v1263_v52, %v1602_v51 }
 0x55a   : > { %1264 = vtanh.f32 %v895_v6 }
 0x55b   : > { %v932_v4 = vsel %vm546_vm1, %v924_v35, 0.0  ;;  %v976_v7 = vsel %vm546_vm1, %v968_v26, 0.0 }
 0x55c   : > { %933 = vadd.xlane.f32.xlu1 %v932_v4  ;;  %977 = vadd.xlane.f32.xlu0 %v976_v7 }
 0x55f   : > { %v897_v8 = vpop.f32.mrf.mxu1 }
 0x560   : > { %v1265_v9 = vpop.eup %1264  ;;  %v898_v10 = vadd.f32 %v897_v8, %v1599_v22  ;;  %v650_v8 = vmax.f32 %v1611_v11, 0.0 }
 0x561   : > { %v925_v53 = vmul.f32 %v1265_v9, %v1580_v36  ;;  %v969_v54 = vmul.f32 %v1265_v9, %v1602_v51 }
 0x562   : > { %1266 = vtanh.f32 %v898_v10 }
 0x563   : > { %v935_v55 = vsel %vm546_vm1, %v925_v53, 0.0  ;;  %v979_v56 = vsel %vm546_vm1, %v969_v54, 0.0 }
 0x564   : > { %936 = vadd.xlane.f32.xlu2 %v935_v55  ;;  %980 = vadd.xlane.f32.xlu1 %v979_v56  ;;  %v671_v56 = vmax.f32 %v1510_v33, 0.0 }
 0x567   : > { %v900_v60 = vpop.f32.mrf.mxu1 }
 0x568   : > { %v1267_v61 = vpop.eup %1266  ;;  %v901_v62 = vadd.f32 %v900_v60, %v1599_v22 }
 0x569   : > { %v970_v0 = vmul.f32 %v1267_v61, %v1602_v51  ;;  %v926_v1 = vmul.f32 %v1267_v61, %v1580_v36 }
 0x56a   : > { %1268 = vtanh.f32 %v901_v62 }
 0x56b   : > { %1270 = vpow2.f32 %v1199_v59  ;;  %v982_v3 = vsel %vm546_vm1, %v970_v0, 0.0  ;;  %v938_v12 = vsel %vm546_vm1, %v926_v1, 0.0 }
 0x56c   : > { %983 = vadd.xlane.f32.xlu2 %v982_v3  ;;  %939 = vadd.xlane.f32.xlu0 %v938_v12  ;;  %1272 = vpow2.f32 %v655_v14 }
 0x56d   : > { %1274 = vpow2.f32 %v676_v15 }
 0x570   : > { %v1269_v17 = vpop.eup %1268 }
 0x571   : > { %v1271_v18 = vpop.eup %1270  ;;  %v927_v20 = vmul.f32 %v1269_v17, %v1580_v36  ;;  %v971_v21 = vmul.f32 %v1269_v17, %v1602_v51 }
 0x572   : > { %v1629_v25 = vadd.f32 1.0, %v1271_v18  ;;  %v1273_v27 = vpop.eup %1272 }
 0x573   : > { %v941_v23 = vsel %vm546_vm1, %v927_v20, 0.0  ;;  %v985_v24 = vsel %vm546_vm1, %v971_v21, 0.0  ;;  %v1275_v49 = vpop.eup %1274  ;;  %v657_v30 = vadd.f32 1.0, %v1273_v27  ;;  %v660_v40 = vmul.f32 -0.5, %v1273_v27 }
 0x574   : > { %942 = vadd.xlane.f32.xlu1 %v941_v23  ;;  %986 = vadd.xlane.f32.xlu0 %v985_v24  ;;  %1276 = vrcp.f32 %v1629_v25  ;;  %v678_v31 = vadd.f32 1.0, %v1275_v49  ;;  %v681_v5 = vmul.f32 -0.5, %v1275_v49  ;;  %v663_v16 = vand.u32 2147483647, %v1273_v27 }
 0x575   : > { %1278 = vlog2.f32 %v657_v30  ;;  %v661_v43 = vadd.f32 1.0, %v660_v40  ;;  %v684_v50 = vand.u32 2147483647, %v1275_v49  ;;  %v645_v54 = vand.u32 2147483648, %v1629_v25 }
 0x576   : > { %1280 = vlog2.f32 %v678_v31  ;;  %v682_v19 = vadd.f32 1.0, %v681_v5  ;;  %vm664_vm9 = vcmp.lt.f32.partialorder %v663_v16, 0.0004427343  ;;  %vm639_vm12 = vweird.f32 %v1629_v25 }
 0x577   : > { %v662_v6 = vmul.f32 %v1273_v27, %v661_v43  ;;  %vm685_vm10 = vcmp.lt.f32.partialorder %v684_v50, 0.0004427343  ;;  %v643_v57 = vand.u32 2147483647, %v1629_v25  ;;  %v646_v3 = vor.u32 1.1754944e-38, %v645_v54 }
 0x578   : > { %v683_v7 = vmul.f32 %v1275_v49, %v682_v19  ;;  %v1306_v19 = vmov 0.0  }
 0x579   : > { %vm644_vm15 = vcmp.eq.f32.partialorder %v643_v57, 8.507059e+37 }
 0x57a   : > { %v1632_v37 = vpop.eup %1276 }
 0x57b   : > { %v635_v39 = vmul.f32 %v1632_v37, %v1629_v25  ;;  %v1279_v41 = vpop.eup %1278  ;;  %vm640_vm11 = vweird.f32 %v1632_v37 }
 0x57c   : > { %v1281_v42 = vpop.eup %1280  ;;  %v659_v46 = vmul.f32 0.6931472, %v1279_v41  ;;  %vm1650_vm13 = vmor %vm639_vm12, %vm640_vm11 }
 0x57d   : > { %v906_v34 = vpop.f32.mrf.mxu2  ;;  %v636_v47 = vsub.f32 1.0, %v635_v39  ;;  %v680_v35 = vmul.f32 0.6931472, %v1281_v42 }
 0x57e   : > { %v907_v38 = vadd.f32 %v906_v34, %v1599_v22  ;;  %v665_v4 = vsel %vm664_vm9, %v662_v6, %v659_v46  ;;  %v693_v34 = vpop.permute.xlu2 %692 }
 0x57f   : > { %v637_v52 = vmul.f32 %v1632_v37, %v636_v47  ;;  %v686_v10 = vsel %vm685_vm10, %v683_v7, %v680_v35  ;;  %v666_v55 = vadd.f32 %v665_v4, %v650_v8 }
 0x580   : > { %1282 = vtanh.f32 %v907_v38  ;;  %v687_v62 = vadd.f32 %v686_v10, %v671_v56 }
 0x581   : > { %v638_v9 = vadd.f32 %v1632_v37, %v637_v52  ;;  %v667_v12 = vsel %vm651_vm14, %v1611_v11, %v666_v55 }
 0x582   : > { %v688_v20 = vsel %vm672_vm0, %v1510_v33, %v687_v62  ;;  %v668_v21 = vsub.f32 1.2039728, %v667_v12 }
 0x583   : > { %v642_v63 = vsel %vm1650_vm13, %v1632_v37, %v638_v9  ;;  %v689_v11 = vsub.f32 0.35667494, %v688_v20 }
 0x584   : > { %v647_v18 = vsel %vm644_vm15, %v646_v3, %v642_v63 }
 0x585   : > { %v909_v13 = vpop.f32.mrf.mxu2  ;;  %v670_v23 = vsub.f32 1.0, %v647_v18  ;;  %v669_v25 = vmul.f32 %v668_v21, %v647_v18 }
 0x586   : > { %v1283_v44 = vpop.eup %1282  ;;  %v910_v45 = vadd.f32 %v909_v13, %v1599_v22 }
 0x587   : > { %v903_v48 = vpop.f32.mrf.mxu1  ;;  %v929_v29 = vmul.f32 %v1283_v44, %v1580_v36  ;;  %v690_v27 = vmul.f32 %v689_v11, %v670_v23 }
 0x588   : > { %1284 = vtanh.f32 %v910_v45  ;;  %v904_v32 = vadd.f32 %v903_v48, %v1599_v22 }
 0x589   : > { %v947_v26 = vsel %vm546_vm1, %v929_v29, 0.0  ;;  %v691_v33 = vadd.f32 %v690_v27, %v669_v25 }
 0x58a   : > { %1286 = vtanh.f32 %v904_v32  ;;  %948 = vadd.xlane.f32.xlu0 %v947_v26 }
 0x58b   : > { %v695_v37 = vmul.f32 %v693_v34, %v691_v33 }
 0x58d   : > { %v912_v58 = vpop.f32.mrf.mxu2  ;;  %v697_v40 = vsel %vm696_vm7, %v695_v37, 0.0 }
 0x58e   : > { %v1285_v53 = vpop.eup %1284  ;;  %v913_v14 = vadd.f32 %v912_v58, %v1599_v22  ;;  %v973_v22 = vmul.f32 %v1283_v44, %v1602_v51  ;;  %v698_v42 = vrot.slane %v697_v40, 4 }
 0x58f   : > { %v974_v59 = vmul.f32 %v1285_v53, %v1602_v51  ;;  %v930_v24 = vmul.f32 %v1285_v53, %v1580_v36 }
 0x590   : > { %v1287_v60 = vpop.eup %1286  ;;  %1288 = vtanh.f32 %v913_v14  ;;  %v991_v49 = vsel %vm546_vm1, %v973_v22, 0.0  ;;  %v699_v47 = vadd.f32 %v698_v42, %v697_v40 }
 0x591   : > { %v994_v0 = vsel %vm546_vm1, %v974_v59, 0.0  ;;  %v928_v1 = vmul.f32 %v1287_v60, %v1580_v36  ;;  %v972_v2 = vmul.f32 %v1287_v60, %v1602_v51  ;;  %v950_v30 = vsel %vm546_vm1, %v930_v24, 0.0 }
 0x592   : > { %995 = vadd.xlane.f32.xlu0 %v994_v0  ;;  %v700_v43 = vrot.slane %v699_v47, 2 }
 0x593   : > { %v944_v15 = vsel %vm546_vm1, %v928_v1, 0.0  ;;  %v988_v17 = vsel %vm546_vm1, %v972_v2, 0.0 }
 0x594   : > { %945 = vadd.xlane.f32.xlu2 %v944_v15  ;;  %989 = vadd.xlane.f32.xlu1 %v988_v17  ;;  %v701_v13 = vadd.f32 %v700_v43, %v699_v47 }
 0x596   : > { %v1289_v31 = vpop.eup %1288  ;;  %v702_v44 = vrot.slane %v701_v13, 1 }
 0x597   : > { %v975_v38 = vmul.f32 %v1289_v31, %v1602_v51  ;;  %v931_v39 = vmul.f32 %v1289_v31, %v1580_v36 }
 0x598   : > { %v703_v16 = vadd.f32 %v702_v44, %v701_v13 }
 0x599   : > { %v997_v5 = vsel %vm546_vm1, %v975_v38, 0.0  ;;  %v953_v41 = vsel %vm546_vm1, %v931_v39, 0.0  ;;  %vm1025_vm1 = vcmask 23568  }
 0x59c   : > { %992 = vadd.xlane.f32.xlu2 %v991_v49  ;;  %951 = vadd.xlane.f32.xlu1 %v950_v30 }
 0x5a4   : > { %998 = vadd.xlane.f32.xlu1 %v997_v5  ;;  %954 = vadd.xlane.f32.xlu2 %v953_v41 }
 0x5bc   : > { %1046 = vrot.lane.b32.xlu2 %v703_v16, %s1305_s30 }
 0x5cf   : > { %v934_v36 = vpop.xlane.xlu1 %933  ;;  %v978_v51 = vpop.xlane.xlu0 %977 }
 0x5d0   : > { %v956_v45 = vadd.f32 %v934_v36, %v1507_v28  ;;  %v1000_v46 = vadd.f32 %v978_v51, %v1507_v28 }
 0x5d2   : > { %1017 = vst.msk [vmem:[%s1547_s18] sm:$0xff] %vm1016_vm2, %v956_v45 }
 0x5d3   : > { %1026 = vst.msk [vmem:[%s1547_s18] sm:$0xff] %vm1025_vm1, %v1000_v46 }
 0x5d4   : > { %1035 = vst.msk [vmem:[%s1547_s18] sm:$0xff] %vm1034_vm3, %v1306_v19 }
 0x5d7   : > { %v981_v48 = vpop.xlane.xlu1 %980  ;;  %v937_v29 = vpop.xlane.xlu2 %936 }
 0x5d8   : > { %v1001_v50 = vadd.f32 %v981_v48, %v1507_v28  ;;  %v957_v32 = vadd.f32 %v937_v29, %v1507_v28 }
 0x5da   : > { %1018 = vst.msk [vmem:[%s1547_s18 + $0x8] sm:$0xff] %vm1016_vm2, %v957_v32 }
 0x5db   : > { %1027 = vst.msk [vmem:[%s1547_s18 + $0x8] sm:$0xff] %vm1025_vm1, %v1001_v50 }
 0x5dc   : > { %1036 = vst.msk [vmem:[%s1547_s18 + $0x8] sm:$0xff] %vm1034_vm3, %v1306_v19 }
 0x5df   : > { %v940_v52 = vpop.xlane.xlu0 %939  ;;  %v984_v6 = vpop.xlane.xlu2 %983 }
 0x5e0   : > { %v958_v35 = vadd.f32 %v940_v52, %v1507_v28  ;;  %v1002_v26 = vadd.f32 %v984_v6, %v1507_v28 }
 0x5e2   : > { %1019 = vst.msk [vmem:[%s1547_s18 + $0x10] sm:$0xff] %vm1016_vm2, %v958_v35 }
 0x5e3   : > { %1028 = vst.msk [vmem:[%s1547_s18 + $0x10] sm:$0xff] %vm1025_vm1, %v1002_v26 }
 0x5e4   : > { %1037 = vst.msk [vmem:[%s1547_s18 + $0x10] sm:$0xff] %vm1034_vm3, %v1306_v19 }
 0x5e7   : > { %v943_v4 = vpop.xlane.xlu1 %942  ;;  %v987_v7 = vpop.xlane.xlu0 %986 }
 0x5e8   : > { %v959_v8 = vadd.f32 %v943_v4, %v1507_v28  ;;  %v1003_v9 = vadd.f32 %v987_v7, %v1507_v28 }
 0x5ea   : > { %1020 = vst.msk [vmem:[%s1547_s18 + $0x18] sm:$0xff] %vm1016_vm2, %v959_v8 }
 0x5eb   : > { %1029 = vst.msk [vmem:[%s1547_s18 + $0x18] sm:$0xff] %vm1025_vm1, %v1003_v9 }
 0x5ec   : > { %1038 = vst.msk [vmem:[%s1547_s18 + $0x18] sm:$0xff] %vm1034_vm3, %v1306_v19 }
 0x5fd   : > { %v949_v10 = vpop.xlane.xlu0 %948 }
 0x5fe   : > { %v961_v53 = vadd.f32 %v949_v10, %v1507_v28 }
 0x600   : > { %1022 = vst.msk [vmem:[%s1547_s18 + $0x28] sm:$0xff] %vm1016_vm2, %v961_v53 }
 0x605   : > { %v996_v58 = vpop.xlane.xlu0 %995 }
 0x606   : > { %v1006_v62 = vadd.f32 %v996_v58, %v1507_v28 }
 0x607   : > { %v990_v54 = vpop.xlane.xlu1 %989  ;;  %v946_v55 = vpop.xlane.xlu2 %945 }
 0x608   : > { %v1004_v56 = vadd.f32 %v990_v54, %v1507_v28  ;;  %v960_v57 = vadd.f32 %v946_v55, %v1507_v28 }
 0x60a   : > { %1021 = vst.msk [vmem:[%s1547_s18 + $0x20] sm:$0xff] %vm1016_vm2, %v960_v57 }
 0x60b   : > { %1030 = vst.msk [vmem:[%s1547_s18 + $0x20] sm:$0xff] %vm1025_vm1, %v1004_v56 }
 0x60c   : > { %1039 = vst.msk [vmem:[%s1547_s18 + $0x20] sm:$0xff] %vm1034_vm3, %v1306_v19 }
 0x60f   : > { %v952_v59 = vpop.xlane.xlu1 %951  ;;  %v993_v60 = vpop.xlane.xlu2 %992 }
 0x610   : > { %v962_v61 = vadd.f32 %v952_v59, %v1507_v28  ;;  %v1005_v63 = vadd.f32 %v993_v60, %v1507_v28 }
 0x612   : > { %1023 = vst.msk [vmem:[%s1547_s18 + $0x30] sm:$0xff] %vm1016_vm2, %v962_v61 }
 0x613   : > { %1032 = vst.msk [vmem:[%s1547_s18 + $0x30] sm:$0xff] %vm1025_vm1, %v1006_v62 }
 0x614   : > { %1041 = vst.msk [vmem:[%s1547_s18 + $0x30] sm:$0xff] %vm1034_vm3, %v1306_v19 }
 0x615   : > { %1031 = vst.msk [vmem:[%s1547_s18 + $0x28] sm:$0xff] %vm1025_vm1, %v1005_v63 }
 0x616   : > { %1040 = vst.msk [vmem:[%s1547_s18 + $0x28] sm:$0xff] %vm1034_vm3, %v1306_v19 }
 0x617   : > { %v999_v0 = vpop.xlane.xlu1 %998  ;;  %v955_v1 = vpop.xlane.xlu2 %954 }
 0x618   : > { %v1007_v2 = vadd.f32 %v999_v0, %v1507_v28  ;;  %v963_v3 = vadd.f32 %v955_v1, %v1507_v28 }
 0x61a   : > { %1024 = vst.msk [vmem:[%s1547_s18 + $0x38] sm:$0xff] %vm1016_vm2, %v963_v3 }
 0x61b   : > { %1033 = vst.msk [vmem:[%s1547_s18 + $0x38] sm:$0xff] %vm1025_vm1, %v1007_v2 }
 0x61c   : > { %1042 = vst.msk [vmem:[%s1547_s18 + $0x38] sm:$0xff] %vm1034_vm3, %v1306_v19 }
 0x61f   : > { %v1047_v12 = vpop.permute.xlu2 %1046 }
 0x620   : > { %1049 = vst.msk [vmem:[%s1531_s16] sm:$0xff] %vm1016_vm2, %v1047_v12 }
 0x621 PF: > { %s19_s27 = sadd.s32 1, %s1296_s27  }
 0x622   : > { %p16_p5 = scmp.ge.s32.totalorder %s19_s27, 4  }
 0x624   :  { %18 = sbr.rel (!%p16_p5) target bundleno = 1 (0x1), region = 99 }

</bundles_post_ra>
